<compile_context>
chip_gen: v7x
topology: tpu7x:2x2x1
jax: 0.10.0
libtpu: 0.0.40
codegen_flags: <defaults>
</compile_context>

<pallas_src>
import functools

import jax
import jax.numpy as jnp
from jax.experimental import pallas as pl
from jax.experimental.pallas import tpu as pltpu


def _residual_block_kernel(x_ref,
                           w1_ref, t1_ref, bc_ref,
                           w2_ref, t2_ref,
                           w3_ref, t3_ref,
                           o_ref,
                           z_ref,
                           *, seq_len):
    # x_ref : (Cin, Bt*L)        activations, channels on sublanes, batch*time on lanes
    # w1_ref: (4*Cout, Cin)      rows = [conv1 tap k=0 ; tap k=2 ; tap k=1 ; 1x1 skip], bf16
    # w2/w3 : (3*Cout, Cout)     rows = [tap k=0 ; tap k=2 ; tap k=1], bf16
    # tK_ref: (Cout, 1) f32      folded conv-bias + BN shift;  bc_ref: skip conv bias
    # o_ref : (Cout, Bt*L) f32
    # z_ref : (2*Cout, Bt*L + 2) f32 VMEM halo scratch (shifted taps only)
    Cout = o_ref.shape[0]
    BtL = o_ref.shape[1]

    # Hoisted batch-boundary masks (built once per grid step, reused by all three layers).
    pos = jax.lax.broadcasted_iota(jnp.int32, (1, BtL), 1)
    col = pos if BtL == seq_len else jax.lax.rem(pos, seq_len)
    has_left = col != 0                 # position t has a valid t-1 neighbour
    has_right = col != seq_len - 1      # position t has a valid t+1 neighbour

    def conv_bn_relu(z, t):
        # z: (3*Cout, Bt*L) f32, rows ordered [tap k=0 ; tap k=2 ; tap k=1].
        # Store only the two shifted taps into the halo scratch at lane offset 1.
        z_ref[:, 1:BtL + 1] = z[0:2 * Cout, :]
        left = jnp.where(has_left, z_ref[0:Cout, 0:BtL], 0.0)           # h[t-1] term
        right = jnp.where(has_right, z_ref[Cout:2 * Cout, 2:BtL + 2], 0.0)  # h[t+1] term
        y = left + right + z[2 * Cout:3 * Cout, :] + t                  # + h[t] term + bias
        return jnp.maximum(y, 0.0)

    # conv1 (3 taps) and the 1x1 skip conv share one wide bf16 MXU matmul.
    xb = x_ref[...].astype(jnp.bfloat16)
    z1 = jnp.dot(w1_ref[...], xb, preferred_element_type=jnp.float32)   # (4*Cout, Bt*L)
    sp = z1[3 * Cout:4 * Cout, :] + bc_ref[...]
    net = conv_bn_relu(z1[0:3 * Cout, :], t1_ref[...])

    z2 = jnp.dot(w2_ref[...], net.astype(jnp.bfloat16),
                 preferred_element_type=jnp.float32)
    net = conv_bn_relu(z2, t2_ref[...])

    z3 = jnp.dot(w3_ref[...], net.astype(jnp.bfloat16),
                 preferred_element_type=jnp.float32)
    net = conv_bn_relu(z3, t3_ref[...])

    o_ref[...] = net + sp


def _vmem_need_bytes(bt, L, Cin, Cout):
    btl = bt * L
    blocks = 2 * 4 * btl * (Cin + Cout)                       # double-buffered in/out (f32)
    weights = 2 * (4 * Cout * Cin + 2 * 3 * Cout * Cout) + 4 * 4 * Cout  # bf16 W + f32 bias
    scratch = 4 * 2 * Cout * (btl + 2)                        # halo scratch
    temps = 4 * btl * (4 * Cout + 3 * Cout + 3 * Cout)        # z / net / tap temporaries
    return blocks + weights + scratch + temps


def _pick_block_batch(N, L, Cin, Cout, budget_bytes):
    """Largest divisor Bt of N that keeps >=2 grid steps (pipelining + v7x megacore)
    and fits the VMEM budget; stop growing once the lane axis is comfortably dense."""
    best = 1
    for bt in range(1, N + 1):
        if N % bt != 0:
            continue
        if N >= 2 and N // bt < 2:
            continue
        if _vmem_need_bytes(bt, L, Cin, Cout) > budget_bytes:
            break
        best = bt
        if bt * L >= 512:
            break
    return best


def residual_block_pallas(x, params, block_batch=None):
    """x: (N, Cin, L) float32 (PyTorch NCL layout). Returns (N, 2*Cin, L) float32."""
    N, Cin, L = x.shape
    Cout = params["t1"].shape[0]

    # VMEM budget from the actual part (64 MiB on v7x, 128 MiB on v5e/v6e).
    try:
        vmem_cap = int(pltpu.get_tpu_info().vmem_capacity_bytes)
    except Exception:
        vmem_cap = 64 * 1024 * 1024
    budget = int(vmem_cap * 0.7)

    if block_batch is None:
        block_batch = _pick_block_batch(N, L, Cin, Cout, budget)
    assert N % block_batch == 0
    G = N // block_batch
    BtL = block_batch * L

    # (N, Cin, L) -> (G, Cin, Bt*L): channels on sublanes, batch*time on lanes.
    xt = jnp.transpose(x, (1, 0, 2)).reshape(Cin, G, BtL)
    xt = jnp.transpose(xt, (1, 0, 2))

    def const_spec(shape):
        return pl.BlockSpec(shape, lambda n: (0, 0))

    in_specs = [
        pl.BlockSpec((None, Cin, BtL), lambda n: (n, 0, 0)),            # x block
        const_spec((4 * Cout, Cin)), const_spec((Cout, 1)), const_spec((Cout, 1)),
        const_spec((3 * Cout, Cout)), const_spec((Cout, 1)),
        const_spec((3 * Cout, Cout)), const_spec((Cout, 1)),
    ]
    out_specs = pl.BlockSpec((None, Cout, BtL), lambda n: (n, 0, 0))

    weight_bytes = 2 * (4 * Cout * Cin + 2 * 3 * Cout * Cout) + 4 * 4 * Cout
    flops = 2 * N * L * (4 * Cout * Cin + 2 * 3 * Cout * Cout)
    bytes_accessed = 4 * (N * Cin * L + N * Cout * L) + weight_bytes

    need = _vmem_need_bytes(block_batch, L, Cin, Cout)
    vmem_limit = int(min(max(2 * need, 32 * 1024 * 1024), budget))
    vmem_limit = max(vmem_limit, need)

    kernel = functools.partial(_residual_block_kernel, seq_len=L)

    out = pl.pallas_call(
        kernel,
        out_shape=jax.ShapeDtypeStruct((G, Cout, BtL), jnp.float32),
        grid=(G,),
        in_specs=in_specs,
        out_specs=out_specs,
        scratch_shapes=[pltpu.VMEM((2 * Cout, BtL + 2), jnp.float32)],
        compiler_params=pltpu.CompilerParams(
            dimension_semantics=("parallel",),
            vmem_limit_bytes=vmem_limit),
        cost_estimate=pl.CostEstimate(
            flops=flops, transcendentals=0, bytes_accessed=bytes_accessed),
    )(xt,
      params["w1"], params["t1"], params["bc"],
      params["w2"], params["t2"],
      params["w3"], params["t3"])

    # (G, Cout, Bt*L) -> (N, Cout, L)
    out = jnp.transpose(out, (1, 0, 2)).reshape(Cout, N, L)
    return jnp.transpose(out, (1, 0, 2))


# ---------------------------------------------------------------------------
# Deterministic parameter construction (synthetic, mirrors the module's shapes)
# ---------------------------------------------------------------------------
def make_params(key, in_channel, ksize=3):
    out_channel = 2 * in_channel
    eps = 1e-5
    keys = jax.random.split(key, 32)
    ki = iter(range(32))

    def conv_w(cout, cin, k):
        fan_in = cin * k
        return (jax.random.normal(keys[next(ki)], (cout, cin, k), jnp.float32)
                / jnp.sqrt(fan_in))

    def conv_b(cout):
        return 0.1 * jax.random.normal(keys[next(ki)], (cout,), jnp.float32)

    def bn(cout):
        gamma = 1.0 + 0.1 * jax.random.normal(keys[next(ki)], (cout,), jnp.float32)
        beta = 0.1 * jax.random.normal(keys[next(ki)], (cout,), jnp.float32)
        mean = 0.1 * jax.random.normal(keys[next(ki)], (cout,), jnp.float32)
        var = 0.5 + 0.1 * jnp.abs(jax.random.normal(keys[next(ki)], (cout,), jnp.float32))
        return gamma, beta, mean, var

    torch_params = {}
    kernel_params = {}
    folded = {}
    layer_channels = [(in_channel, out_channel), (out_channel, out_channel),
                      (out_channel, out_channel)]
    for idx, (cin, cout) in enumerate(layer_channels, start=1):
        w = conv_w(cout, cin, ksize)          # torch layout (Cout, Cin, K)
        b = conv_b(cout)
        gamma, beta, mean, var = bn(cout)
        torch_params[f"conv{idx}"] = (w, b)
        torch_params[f"bn{idx}"] = (gamma, beta, mean, var)
        # Fold BN scale into the conv weights, conv-bias + BN-shift into a single add.
        scale = gamma / jnp.sqrt(var + eps)                   # (Cout,)
        shift = beta + (b - mean) * scale                     # (Cout,)
        w_scaled = w * scale[:, None, None]
        # Stack taps along the output-row axis in order [k=0, k=2, k=1] so the two
        # shifted taps are contiguous (single scratch store in the kernel).
        folded[idx] = jnp.concatenate(
            [w_scaled[:, :, 0], w_scaled[:, :, 2], w_scaled[:, :, 1]], axis=0)
        kernel_params[f"t{idx}"] = shift[:, None]             # (Cout, 1) f32

    wskip = conv_w(out_channel, in_channel, 1)                # (Cout, Cin, 1)
    bskip = conv_b(out_channel)
    torch_params["conv"] = (wskip, bskip)

    # Fuse the 1x1 skip conv under conv1's stacked weight; pre-cast all weights to bf16.
    kernel_params["w1"] = jnp.concatenate([folded[1], wskip[:, :, 0]],
                                          axis=0).astype(jnp.bfloat16)   # (4*Cout, Cin)
    kernel_params["w2"] = folded[2].astype(jnp.bfloat16)                 # (3*Cout, Cout)
    kernel_params["w3"] = folded[3].astype(jnp.bfloat16)                 # (3*Cout, Cout)
    kernel_params["bc"] = bskip[:, None]                                 # (Cout, 1) f32

    return torch_params, kernel_params, eps


# ---------------------------------------------------------------------------
# Pure-JAX reference (exact PyTorch eval-mode semantics, NCL layout, f32)
# ---------------------------------------------------------------------------
def _conv1d_ref(x, w, b):
    K = w.shape[2]
    pad = (K - 1) // 2
    L = x.shape[2]
    xp = jnp.pad(x, ((0, 0), (0, 0), (pad, pad)))
    out = b[None, :, None]
    for k in range(K):
        out = out + jnp.einsum("ncl,oc->nol", xp[:, :, k:k + L], w[:, :, k])
    return out


def _bn_ref(x, gamma, beta, mean, var, eps):
    return ((x - mean[None, :, None]) / jnp.sqrt(var[None, :, None] + eps)
            * gamma[None, :, None] + beta[None, :, None])


def residual_block_ref(x, torch_params, eps):
    net = x
    for idx in (1, 2, 3):
        w, b = torch_params[f"conv{idx}"]
        gamma, beta, mean, var = torch_params[f"bn{idx}"]
        net = jnp.maximum(_bn_ref(_conv1d_ref(net, w, b), gamma, beta, mean, var, eps), 0.0)
    wskip, bskip = torch_params["conv"]
    sp = _conv1d_ref(x, wskip, bskip)
    return net + sp


if __name__ == "__main__":
    key = jax.random.PRNGKey(0)
    k_x, k_p = jax.random.split(key)

    N, Cin, L = 2, 4, 16
    x = jax.random.normal(k_x, (N, Cin, L), jnp.float32)

    torch_params, kernel_params, eps = make_params(k_p, Cin)

    out = residual_block_pallas(x, kernel_params)
    out = jax.block_until_ready(out)

    ref = residual_block_ref(x, torch_params, eps)
    assert out.shape == (N, 2 * Cin, L)
    err = float(jnp.max(jnp.abs(out - ref)))
    # bf16 MXU inputs (f32 accumulate) -> relaxed tolerance vs the f32 reference.
    assert jnp.allclose(out, ref, atol=5e-2, rtol=5e-2), err

    print("KERNEL_OK")
</pallas_src>

<mosaic_0001>
module attributes {stable_mosaic.version = 11 : i64} {
  func.func @_residual_block_kernel(%arg0: i32, %arg1: memref<1x4x16xf32, #tpu.memory_space<vmem>>, %arg2: memref<32x4xbf16, #tpu.memory_space<vmem>>, %arg3: memref<8x1xf32, #tpu.memory_space<vmem>>, %arg4: memref<8x1xf32, #tpu.memory_space<vmem>>, %arg5: memref<24x8xbf16, #tpu.memory_space<vmem>>, %arg6: memref<8x1xf32, #tpu.memory_space<vmem>>, %arg7: memref<24x8xbf16, #tpu.memory_space<vmem>>, %arg8: memref<8x1xf32, #tpu.memory_space<vmem>>, %arg9: memref<1x8x16xf32, #tpu.memory_space<vmem>>, %arg10: memref<16x18xf32, #tpu.memory_space<vmem>>) attributes {dimension_semantics = [#tpu.dimension_semantics<parallel>], iteration_bounds = array<i64: 2>, scalar_prefetch = 0 : i64, scratch_operands = 1 : i64, tpu.core_type = #tpu.core_type<tc>, window_params = [{transform_indices = @transform_0, window_bounds = array<i64: 1, 4, 16>}, {pipeline_mode = #tpu.pipeline_mode<synchronous>, transform_indices = @transform_1, window_bounds = array<i64: 32, 4>}, {pipeline_mode = #tpu.pipeline_mode<synchronous>, transform_indices = @transform_2, window_bounds = array<i64: 8, 1>}, {pipeline_mode = #tpu.pipeline_mode<synchronous>, transform_indices = @transform_3, window_bounds = array<i64: 8, 1>}, {pipeline_mode = #tpu.pipeline_mode<synchronous>, transform_indices = @transform_4, window_bounds = array<i64: 24, 8>}, {pipeline_mode = #tpu.pipeline_mode<synchronous>, transform_indices = @transform_5, window_bounds = array<i64: 8, 1>}, {pipeline_mode = #tpu.pipeline_mode<synchronous>, transform_indices = @transform_6, window_bounds = array<i64: 24, 8>}, {pipeline_mode = #tpu.pipeline_mode<synchronous>, transform_indices = @transform_7, window_bounds = array<i64: 8, 1>}, {transform_indices = @transform_8, window_bounds = array<i64: 1, 8, 16>}]} {
    %0 = tpu.iota {dimensions = array<i32: 1>} : vector<1x16xi32>
    %c0_i32 = arith.constant 0 : i32
    %1 = vector.broadcast %c0_i32 : i32 to vector<1x16xi32>
    %2 = arith.cmpi ne, %0, %1 : vector<1x16xi32>
    %c15_i32 = arith.constant 15 : i32
    %3 = vector.broadcast %c15_i32 : i32 to vector<1x16xi32>
    %4 = arith.cmpi ne, %0, %3 : vector<1x16xi32>
    %c0 = arith.constant 0 : index
    %c0_0 = arith.constant 0 : index
    %c0_1 = arith.constant 0 : index
    %5 = vector.load %arg1[%c0, %c0_0, %c0_1] : memref<1x4x16xf32, #tpu.memory_space<vmem>>, vector<1x4x16xf32>
    %6 = vector.shape_cast %5 : vector<1x4x16xf32> to vector<4x16xf32>
    %7 = arith.truncf %6 : vector<4x16xf32> to vector<4x16xbf16>
    %c0_2 = arith.constant 0 : index
    %c0_3 = arith.constant 0 : index
    %8 = vector.load %arg2[%c0_2, %c0_3] : memref<32x4xbf16, #tpu.memory_space<vmem>>, vector<32x4xbf16>
    %cst = arith.constant dense<0.000000e+00> : vector<32x16xf32>
    %9 = tpu.matmul %8, %7, %cst {dimension_numbers = #tpu.dot_dimension_numbers<[1], [0], [0], [1], [0, 0, 1, 1], [], []>} : vector<32x4xbf16>, vector<4x16xbf16>, vector<32x16xf32> -> vector<32x16xf32>
    %10 = vector.extract_strided_slice %9 {offsets = [24, 0], sizes = [8, 16], strides = [1, 1]} : vector<32x16xf32> to vector<8x16xf32>
    %c0_4 = arith.constant 0 : index
    %c0_5 = arith.constant 0 : index
    %11 = vector.load %arg4[%c0_4, %c0_5] : memref<8x1xf32, #tpu.memory_space<vmem>>, vector<8x1xf32>
    %12 = vector.broadcast %11 : vector<8x1xf32> to vector<8x16xf32>
    %13 = arith.addf %10, %12 : vector<8x16xf32>
    %14 = vector.extract_strided_slice %9 {offsets = [0, 0], sizes = [24, 16], strides = [1, 1]} : vector<32x16xf32> to vector<24x16xf32>
    %c0_6 = arith.constant 0 : index
    %c0_7 = arith.constant 0 : index
    %15 = vector.load %arg3[%c0_6, %c0_7] : memref<8x1xf32, #tpu.memory_space<vmem>>, vector<8x1xf32>
    %16 = vector.extract_strided_slice %14 {offsets = [0, 0], sizes = [16, 16], strides = [1, 1]} : vector<24x16xf32> to vector<16x16xf32>
    %c0_8 = arith.constant 0 : index
    %c1 = arith.constant 1 : index
    %17 = vector.load %arg10[%c0_8, %c1] : memref<16x18xf32, #tpu.memory_space<vmem>>, vector<16x16xf32>
    tpu.vector_store %arg10[%c0_8, %c1], %16 {strides = array<i32>} : memref<16x18xf32, #tpu.memory_space<vmem>>, vector<16x16xf32>,
    %c0_9 = arith.constant 0 : index
    %c0_10 = arith.constant 0 : index
    %18 = vector.load %arg10[%c0_9, %c0_10] : memref<16x18xf32, #tpu.memory_space<vmem>>, vector<8x16xf32>
    %cst_11 = arith.constant 0.000000e+00 : f32
    %19 = vector.shape_cast %2 : vector<1x16xi1> to vector<1x16xi1>
    %20 = vector.broadcast %19 : vector<1x16xi1> to vector<8x16xi1>
    %21 = vector.broadcast %cst_11 : f32 to vector<8x16xf32>
    %22 = arith.select %20, %18, %21 : vector<8x16xi1>, vector<8x16xf32>
    %c8 = arith.constant 8 : index
    %c2 = arith.constant 2 : index
    %23 = vector.load %arg10[%c8, %c2] : memref<16x18xf32, #tpu.memory_space<vmem>>, vector<8x16xf32>
    %cst_12 = arith.constant 0.000000e+00 : f32
    %24 = vector.shape_cast %4 : vector<1x16xi1> to vector<1x16xi1>
    %25 = vector.broadcast %24 : vector<1x16xi1> to vector<8x16xi1>
    %26 = vector.broadcast %cst_12 : f32 to vector<8x16xf32>
    %27 = arith.select %25, %23, %26 : vector<8x16xi1>, vector<8x16xf32>
    %28 = arith.addf %22, %27 : vector<8x16xf32>
    %29 = vector.extract_strided_slice %14 {offsets = [16, 0], sizes = [8, 16], strides = [1, 1]} : vector<24x16xf32> to vector<8x16xf32>
    %30 = arith.addf %28, %29 : vector<8x16xf32>
    %31 = vector.broadcast %15 : vector<8x1xf32> to vector<8x16xf32>
    %32 = arith.addf %30, %31 : vector<8x16xf32>
    %cst_13 = arith.constant 0.000000e+00 : f32
    %33 = vector.broadcast %cst_13 : f32 to vector<8x16xf32>
    %34 = arith.maximumf %32, %33 : vector<8x16xf32>
    %c0_14 = arith.constant 0 : index
    %c0_15 = arith.constant 0 : index
    %35 = vector.load %arg5[%c0_14, %c0_15] : memref<24x8xbf16, #tpu.memory_space<vmem>>, vector<24x8xbf16>
    %36 = arith.truncf %34 : vector<8x16xf32> to vector<8x16xbf16>
    %cst_16 = arith.constant dense<0.000000e+00> : vector<24x16xf32>
    %37 = tpu.matmul %35, %36, %cst_16 {dimension_numbers = #tpu.dot_dimension_numbers<[1], [0], [0], [1], [0, 0, 1, 1], [], []>} : vector<24x8xbf16>, vector<8x16xbf16>, vector<24x16xf32> -> vector<24x16xf32>
    %c0_17 = arith.constant 0 : index
    %c0_18 = arith.constant 0 : index
    %38 = vector.load %arg6[%c0_17, %c0_18] : memref<8x1xf32, #tpu.memory_space<vmem>>, vector<8x1xf32>
    %39 = vector.extract_strided_slice %37 {offsets = [0, 0], sizes = [16, 16], strides = [1, 1]} : vector<24x16xf32> to vector<16x16xf32>
    %c0_19 = arith.constant 0 : index
    %c1_20 = arith.constant 1 : index
    %40 = vector.load %arg10[%c0_19, %c1_20] : memref<16x18xf32, #tpu.memory_space<vmem>>, vector<16x16xf32>
    tpu.vector_store %arg10[%c0_19, %c1_20], %39 {strides = array<i32>} : memref<16x18xf32, #tpu.memory_space<vmem>>, vector<16x16xf32>,
    %c0_21 = arith.constant 0 : index
    %c0_22 = arith.constant 0 : index
    %41 = vector.load %arg10[%c0_21, %c0_22] : memref<16x18xf32, #tpu.memory_space<vmem>>, vector<8x16xf32>
    %cst_23 = arith.constant 0.000000e+00 : f32
    %42 = vector.shape_cast %2 : vector<1x16xi1> to vector<1x16xi1>
    %43 = vector.broadcast %42 : vector<1x16xi1> to vector<8x16xi1>
    %44 = vector.broadcast %cst_23 : f32 to vector<8x16xf32>
    %45 = arith.select %43, %41, %44 : vector<8x16xi1>, vector<8x16xf32>
    %c8_24 = arith.constant 8 : index
    %c2_25 = arith.constant 2 : index
    %46 = vector.load %arg10[%c8_24, %c2_25] : memref<16x18xf32, #tpu.memory_space<vmem>>, vector<8x16xf32>
    %cst_26 = arith.constant 0.000000e+00 : f32
    %47 = vector.shape_cast %4 : vector<1x16xi1> to vector<1x16xi1>
    %48 = vector.broadcast %47 : vector<1x16xi1> to vector<8x16xi1>
    %49 = vector.broadcast %cst_26 : f32 to vector<8x16xf32>
    %50 = arith.select %48, %46, %49 : vector<8x16xi1>, vector<8x16xf32>
    %51 = arith.addf %45, %50 : vector<8x16xf32>
    %52 = vector.extract_strided_slice %37 {offsets = [16, 0], sizes = [8, 16], strides = [1, 1]} : vector<24x16xf32> to vector<8x16xf32>
    %53 = arith.addf %51, %52 : vector<8x16xf32>
    %54 = vector.broadcast %38 : vector<8x1xf32> to vector<8x16xf32>
    %55 = arith.addf %53, %54 : vector<8x16xf32>
    %cst_27 = arith.constant 0.000000e+00 : f32
    %56 = vector.broadcast %cst_27 : f32 to vector<8x16xf32>
    %57 = arith.maximumf %55, %56 : vector<8x16xf32>
    %c0_28 = arith.constant 0 : index
    %c0_29 = arith.constant 0 : index
    %58 = vector.load %arg7[%c0_28, %c0_29] : memref<24x8xbf16, #tpu.memory_space<vmem>>, vector<24x8xbf16>
    %59 = arith.truncf %57 : vector<8x16xf32> to vector<8x16xbf16>
    %cst_30 = arith.constant dense<0.000000e+00> : vector<24x16xf32>
    %60 = tpu.matmul %58, %59, %cst_30 {dimension_numbers = #tpu.dot_dimension_numbers<[1], [0], [0], [1], [0, 0, 1, 1], [], []>} : vector<24x8xbf16>, vector<8x16xbf16>, vector<24x16xf32> -> vector<24x16xf32>
    %c0_31 = arith.constant 0 : index
    %c0_32 = arith.constant 0 : index
    %61 = vector.load %arg8[%c0_31, %c0_32] : memref<8x1xf32, #tpu.memory_space<vmem>>, vector<8x1xf32>
    %62 = vector.extract_strided_slice %60 {offsets = [0, 0], sizes = [16, 16], strides = [1, 1]} : vector<24x16xf32> to vector<16x16xf32>
    %c0_33 = arith.constant 0 : index
    %c1_34 = arith.constant 1 : index
    %63 = vector.load %arg10[%c0_33, %c1_34] : memref<16x18xf32, #tpu.memory_space<vmem>>, vector<16x16xf32>
    tpu.vector_store %arg10[%c0_33, %c1_34], %62 {strides = array<i32>} : memref<16x18xf32, #tpu.memory_space<vmem>>, vector<16x16xf32>,
    %c0_35 = arith.constant 0 : index
    %c0_36 = arith.constant 0 : index
    %64 = vector.load %arg10[%c0_35, %c0_36] : memref<16x18xf32, #tpu.memory_space<vmem>>, vector<8x16xf32>
    %cst_37 = arith.constant 0.000000e+00 : f32
    %65 = vector.shape_cast %2 : vector<1x16xi1> to vector<1x16xi1>
    %66 = vector.broadcast %65 : vector<1x16xi1> to vector<8x16xi1>
    %67 = vector.broadcast %cst_37 : f32 to vector<8x16xf32>
    %68 = arith.select %66, %64, %67 : vector<8x16xi1>, vector<8x16xf32>
    %c8_38 = arith.constant 8 : index
    %c2_39 = arith.constant 2 : index
    %69 = vector.load %arg10[%c8_38, %c2_39] : memref<16x18xf32, #tpu.memory_space<vmem>>, vector<8x16xf32>
    %cst_40 = arith.constant 0.000000e+00 : f32
    %70 = vector.shape_cast %4 : vector<1x16xi1> to vector<1x16xi1>
    %71 = vector.broadcast %70 : vector<1x16xi1> to vector<8x16xi1>
    %72 = vector.broadcast %cst_40 : f32 to vector<8x16xf32>
    %73 = arith.select %71, %69, %72 : vector<8x16xi1>, vector<8x16xf32>
    %74 = arith.addf %68, %73 : vector<8x16xf32>
    %75 = vector.extract_strided_slice %60 {offsets = [16, 0], sizes = [8, 16], strides = [1, 1]} : vector<24x16xf32> to vector<8x16xf32>
    %76 = arith.addf %74, %75 : vector<8x16xf32>
    %77 = vector.broadcast %61 : vector<8x1xf32> to vector<8x16xf32>
    %78 = arith.addf %76, %77 : vector<8x16xf32>
    %cst_41 = arith.constant 0.000000e+00 : f32
    %79 = vector.broadcast %cst_41 : f32 to vector<8x16xf32>
    %80 = arith.maximumf %78, %79 : vector<8x16xf32>
    %81 = arith.addf %80, %13 : vector<8x16xf32>
    %c0_42 = arith.constant 0 : index
    %c0_43 = arith.constant 0 : index
    %c0_44 = arith.constant 0 : index
    %82 = vector.load %arg9[%c0_42, %c0_43, %c0_44] : memref<1x8x16xf32, #tpu.memory_space<vmem>>, vector<1x8x16xf32>
    %83 = vector.shape_cast %82 : vector<1x8x16xf32> to vector<8x16xf32>
    %84 = vector.shape_cast %81 : vector<8x16xf32> to vector<1x8x16xf32>
    tpu.vector_store %arg9[%c0_42, %c0_43, %c0_44], %84 {strides = array<i32>} : memref<1x8x16xf32, #tpu.memory_space<vmem>>, vector<1x8x16xf32>,
    return
  }
  func.func @transform_0(%arg0: i32) -> (i32, i32, i32) {
    %c0_i32 = arith.constant 0 : i32
    %c0_i32_0 = arith.constant 0 : i32
    %c0_i32_1 = arith.constant 0 : i32
    return %arg0, %c0_i32, %c0_i32_0 : i32, i32, i32
  }
  func.func @transform_1(%arg0: i32) -> (i32, i32) {
    %c0_i32 = arith.constant 0 : i32
    %c0_i32_0 = arith.constant 0 : i32
    %c0_i32_1 = arith.constant 0 : i32
    return %c0_i32, %c0_i32_0 : i32, i32
  }
  func.func @transform_2(%arg0: i32) -> (i32, i32) {
    %c0_i32 = arith.constant 0 : i32
    %c0_i32_0 = arith.constant 0 : i32
    %c0_i32_1 = arith.constant 0 : i32
    return %c0_i32, %c0_i32_0 : i32, i32
  }
  func.func @transform_3(%arg0: i32) -> (i32, i32) {
    %c0_i32 = arith.constant 0 : i32
    %c0_i32_0 = arith.constant 0 : i32
    %c0_i32_1 = arith.constant 0 : i32
    return %c0_i32, %c0_i32_0 : i32, i32
  }
  func.func @transform_4(%arg0: i32) -> (i32, i32) {
    %c0_i32 = arith.constant 0 : i32
    %c0_i32_0 = arith.constant 0 : i32
    %c0_i32_1 = arith.constant 0 : i32
    return %c0_i32, %c0_i32_0 : i32, i32
  }
  func.func @transform_5(%arg0: i32) -> (i32, i32) {
    %c0_i32 = arith.constant 0 : i32
    %c0_i32_0 = arith.constant 0 : i32
    %c0_i32_1 = arith.constant 0 : i32
    return %c0_i32, %c0_i32_0 : i32, i32
  }
  func.func @transform_6(%arg0: i32) -> (i32, i32) {
    %c0_i32 = arith.constant 0 : i32
    %c0_i32_0 = arith.constant 0 : i32
    %c0_i32_1 = arith.constant 0 : i32
    return %c0_i32, %c0_i32_0 : i32, i32
  }
  func.func @transform_7(%arg0: i32) -> (i32, i32) {
    %c0_i32 = arith.constant 0 : i32
    %c0_i32_0 = arith.constant 0 : i32
    %c0_i32_1 = arith.constant 0 : i32
    return %c0_i32, %c0_i32_0 : i32, i32
  }
  func.func @transform_8(%arg0: i32) -> (i32, i32, i32) {
    %c0_i32 = arith.constant 0 : i32
    %c0_i32_0 = arith.constant 0 : i32
    %c0_i32_1 = arith.constant 0 : i32
    return %arg0, %c0_i32, %c0_i32_0 : i32, i32, i32
  }
}

</mosaic_0001>

<bundles_post_ra>
// kernel: tpu_custom_call.1
= control target key start
LH: loop header
LB: loop body
LE: loop exit
PB: predicated region body
PF: predicated region fallthrough
CT: control target
= control target key end

     0   :  { %13 = vsyncpa [#allocation4], 0  ;;  %s1081_s0 = inlined_call_operand.vmem [shape: f32[2,4,16], index: 0, kind: input, shape index: {}]   ;;  %s1082_s1 = inlined_call_operand.vmem [shape: bf16[32,4], index: 1, kind: input, shape index: {}]   ;;  %s1083_s2 = inlined_call_operand.vmem [shape: f32[8,1], index: 2, kind: input, shape index: {}]   ;;  %s1084_s3 = inlined_call_operand.vmem [shape: f32[8,1], index: 3, kind: input, shape index: {}]   ;;  %s1085_s4 = inlined_call_operand.vmem [shape: bf16[24,8], index: 4, kind: input, shape index: {}]   ;;  %s1086_s5 = inlined_call_operand.vmem [shape: f32[8,1], index: 5, kind: input, shape index: {}]   ;;  %s1087_s6 = inlined_call_operand.vmem [shape: bf16[24,8], index: 6, kind: input, shape index: {}]   ;;  %s1088_s7 = inlined_call_operand.vmem [shape: f32[8,1], index: 7, kind: input, shape index: {}]   ;;  %s1089_s8 = inlined_call_operand.hbm [shape: f32[2,8,16], index: 8, kind: output, shape index: {}]  }
   0x1   :  { %15 = vsyncpa [#allocation4 + $0x1], 0  ;;  %s909_s27 = smov 0   ;;  %s911_s28 = smov 0  }
   0x2   :  { %s913_s29 = smov 0   ;;  %s915_s30 = smov 0  }
   0x3 LB: > { %s930_s9 = sadd.s32 4294967295, %s858_s30   ;;  %s694_s10 = sadd.s32 4294967294, %s858_s30   ;;  %s858_s30 = sphi %s915_s30, %s1095_s30   ;;  %s854_s29 = sphi %s913_s29, %s1094_s29   ;;  %s850_s28 = sphi %s911_s28, %s1093_s28   ;;  %s846_s27 = sphi %s909_s27, %s1092_s27  }
   0x4   : > { %s934_s11 = sadd.s32 1, %s858_s30   ;;  %s201_s12 = sadd.s32 1, %s854_s29 }
   0x5   : > { %s198_s13 = ssub.s32 %s858_s30, %s934_s11  ;;  %p211_p0 = scmp.ne.s32.totalorder %s854_s29, %s850_s28 }
   0x6   : > { %p199_p1 = scmp.eq.s32.totalorder %s198_s13, 0  ;;  %p212_p2 = scmp.eq.s32.totalorder %s930_s9, 1 }
   0x7   : > { %p217_p3 = scmp.ne.s32.totalorder %s850_s28, %s846_s27  ;;  %p218_p4 = scmp.eq.s32.totalorder %s694_s10, 1 }
   0x8   : > { %s945_s14 = scalar_select %p199_p1, %s854_s29, %s201_s12  }
   0x9   : > { %p947_p5 = por %p212_p2, %p211_p0  ;;  %p951_p6 = por %p218_p4, %p217_p3 }
   0xa   : > { %p697_p7 = scmp.ge.s32.totalorder %s858_s30, 1  ;;  %p264_p8 = scmp.lt.s32.totalorder %s858_s30, 3 }
   0xc   : > { %p265_p9 = pnand %p697_p7, %p264_p8 }
   0xd   : > { %p297_p10 = scmp.lt.s32.totalorder (!%p265_p9), %s930_s9, 1  ;;  %v790_v0 = vld [vmem:[%s1082_s1] sm:$0xff] (!%p265_p9)   ;;  %vm322_vm0 = vcmask (!%p265_p9), 31744   ;;  %vm329_vm1 = vcmask (!%p265_p9), 1041408   ;;  %v791_v4 = vld [vmem:[%s1082_s1 + $0x8] sm:$0xff] (!%p265_p9)   ;;  %v860_v6 = vmov (!%p265_p9), 0   ;;  %v302_v15 = vlaneseq (!%p265_p9) }
   0xe   : > { %268 = sbr.rel (%p265_p9) target bundleno = 1446 (0x5a6), region = 52  ;;  %727 = vmatprep.mubr.msk.bf16.mxu0 (!%p265_p9), %vm322_vm0, %v790_v0  ;;  %v389_v5 = vld [vmem:[%s1083_s2] sm:$0xff] (!%p265_p9)  ;;  %788 = vset.pattern.permute.xlu1 (!%p265_p9), %v860_v6  ;;  %s861_s12 = smov (!%p265_p9), 1   ;;  %vm398_vm2 = vcmask (!%p265_p9), 138248   ;;  %vm434_vm3 = vcmask (!%p265_p9), 64512   ;;  %vm441_vm6 = vcmask (!%p265_p9), 1043456  }
   0xf   : > { %789 = vset.pattern.permute.xlu0 (!%p265_p9), %v860_v6  ;;  %417 = vperm.xlu1 (!%p265_p9), %788, %v389_v5   ;;  %v792_v14 = vld [vmem:[%s1085_s4] sm:$0xff] (!%p265_p9)   ;;  %s862_s18 = smov (!%p265_p9), 126   ;;  %v982_v17 = vand.u32 (!%p265_p9), 127, %v302_v15  ;;  %v793_v28 = vld [vmem:[%s1085_s4 + $0x8] ss:$0 sps:$4 sm:$0xff] (!%p265_p9)   ;;  %s713_s21 = sshll.u32 (!%p265_p9), %s930_s9, 7 }
  0x10   : > { %733 = vmatprep.mubr.msk.bf16.mxu1 (!%p265_p9), %vm434_vm3, %v792_v14  ;;  %v493_v33 = vld [vmem:[%s1086_s5] sm:$0xff] (!%p265_p9)  ;;  %v795_v49 = vld [vmem:[%s1087_s6 + $0x8] ss:$0 sps:$4 sm:$0xff] (!%p265_p9)   ;;  %vm619_vm7 = vcmask (!%p265_p9), 130048   ;;  %s1039_s25 = scalar_lea.hbm (!%p265_p9), %s1089_s8, %s713_s21  ;;  %s863_s10 = smov (!%p265_p9), [#allocation3]  }
  0x11   : > { %vm304_vm4 = vcmp.ne.s32.totalorder (!%p265_p9), %v982_v17, 0  ;;  %vm305_vm5 = vcmp.ne.s32.totalorder (!%p265_p9), %v982_v17, 15  ;;  %v794_v37 = vld [vmem:[%s1087_s6] sm:$0xff] (!%p265_p9)   ;;  %s800_s13 = sshll.u32 (!%p265_p9), %s863_s10, 4  ;;  %s801_s13 = int_to_ptr.vmem [resolvable:$false] %s800_s13 }
  0x12   : > { %v382_v54 = vld [vmem:[%s1084_s3] sm:$0xff] (!%p265_p9)  ;;  %s802_s17 = scalar_lea.vmem (!%p265_p9), %s801_s13, 256 }
  0x13   : > { %v590_v55 = vld [vmem:[%s1088_s7] sm:$0xff] (!%p265_p9) }
  0x15   : > { %s298_s19 = scalar_select %p297_p10, %s930_s9, 1 }
  0x17   : > { %s699_s20 = sshll.u32 %s298_s19, 2 }
  0x18   : > { %s300_s23 = scalar_lea.vmem %s1081_s0, %s699_s20  ;;  %s294_s20 = sand.u32 1, %s850_s28  }
  0x19   : > { %v306_v1 = vld [vmem:[%s300_s23] sm:$0xf]  ;;  %s622_s26 = scalar_lea.sflag [#allocation4], %s294_s20 }
  0x1a   : > { %v307_v2 = vpack.c.bf16 %v306_v1, %v306_v1 }
  0x1c   : > { %743 = vmatprep.subr.msk.bf16.mxu0 %vm329_vm1, %v307_v2  ;;  %v331_v3 = vsel %vm329_vm1, %v307_v2, 0 }
  0x1d   : > { %726 = vmatpush3.bf16.msra.mxu0 %v331_v3 }
  0x20   : > { %728 = vmatmul.mubr.msk.bf16.vlgmr.msra.gmra.mrb[0].mxu0 %vm322_vm0, %v791_v4 }
  0x21   : > { %739 = vmatprep.mubr.msk.bf16.mxu0 %vm434_vm3, %v794_v37 }
  0x8e   : > { %v418_v16 = vpop.permute.xlu1 %417 }
  0xf3   : > { %v729_v7 = vpop.f32.mrb[0].mxu0 }
  0xf4   : > { %v367_v8 = vpop.f32.mrb[1].mxu0 }
  0xf5   : > { %v971_v9 = vpop.f32.mrb[2].mxu0 }
  0xf6   : > { %v370_v10 = vpop.f32.mrb[3].mxu0 }
  0xf7   : > { %394 = vrot.lane.b32.xlu0 %v370_v10, %s861_s12 }
  0xfb   : > { %392 = vrot.lane.b32.xlu0 %v367_v8, %s861_s12 }
 0x169   : > { %v395_v11 = vpop.permute.xlu0 %394 }
 0x16a   : > { %400 = vst.msk [vmem:[#allocation2 + $0x8] sm:$0xff] %vm398_vm2, %v395_v11 }
 0x16d   : > { %v393_v12 = vpop.permute.xlu0 %392 }
 0x16e   : > { %399 = vst.msk [vmem:[#allocation2] sm:$0xff] %vm398_vm2, %v393_v12 }
 0x171   : > { %v405_v13 = vld [vmem:[#allocation2 + $0x8] sm:$0xff] }
 0x172   : > { %409 = vrot.lane.b32.xlu1 %v405_v13, %s862_s18 }
 0x175   : > { %v401_v18 = vld [vmem:[#allocation2] sm:$0xff] }
 0x176   : > { %v404_v20 = vsel %vm304_vm4, %v401_v18, 0.0 }
 0x1e4   : > { %v410_v19 = vpop.permute.xlu1 %409 }
 0x1e5   : > { %v412_v21 = vsel %vm305_vm5, %v410_v19, 0.0 }
 0x1e6   : > { %v413_v22 = vadd.f32 %v412_v21, %v404_v20 }
 0x1e8   : > { %v414_v23 = vadd.f32 %v729_v7, %v413_v22 }
 0x1ea   : > { %v420_v24 = vadd.f32 %v418_v16, %v414_v23 }
 0x1ec   : > { %v421_v25 = vmax.f32 %v420_v24, 0.0 }
 0x1ee   : > { %v425_v26 = vpack.c.bf16 %v421_v25, %v421_v25 }
 0x1f0   : > { %744 = vmatprep.subr.msk.bf16.mxu1 %vm441_vm6, %v425_v26  ;;  %v443_v27 = vsel %vm441_vm6, %v425_v26, 0 }
 0x1f1   : > { %732 = vmatpush3.bf16.msra.mxu1 %v443_v27 }
 0x1f4   : > { %734 = vmatmul.mubr.msk.bf16.vlgmr.msra.gmra.mrb[0].mxu1 %vm434_vm3, %v793_v28 }
 0x2c7   : > { %v735_v29 = vpop.f32.mrb[0].mxu1 }
 0x2c8   : > { %v479_v30 = vpop.f32.mrb[1].mxu1 }
 0x2c9   : > { %496 = vrot.lane.b32.xlu1 %v479_v30, %s861_s12  ;;  %v736_v31 = vpop.f32.mrb[2].mxu1 }
 0x2ca   : > { %v482_v32 = vpop.f32.mrb[3].mxu1 }
 0x2cb   : > { %498 = vrot.lane.b32.xlu0 %v482_v32, %s861_s12 }
 0x2cf   : > { %516 = vperm.xlu0 %789, %v493_v33  }
 0x33b   : > { %v497_v34 = vpop.permute.xlu1 %496 }
 0x33c   : > { %502 = vst.msk [vmem:[#allocation2] sm:$0xff] %vm398_vm2, %v497_v34 }
 0x33d   : > { %v499_v35 = vpop.permute.xlu0 %498 }
 0x33e   : > { %503 = vst.msk [vmem:[#allocation2 + $0x8] sm:$0xff] %vm398_vm2, %v499_v35 }
 0x343   : > { %v504_v38 = vld [vmem:[#allocation2] sm:$0xff] }
 0x344   : > { %v505_v40 = vsel %vm304_vm4, %v504_v38, 0.0 }
 0x345   : > { %v506_v36 = vld [vmem:[#allocation2 + $0x8] sm:$0xff] }
 0x346   : > { %508 = vrot.lane.b32.xlu1 %v506_v36, %s862_s18 }
 0x34e   : > { %v517_v43 = vpop.permute.xlu0 %516 }
 0x3b8   : > { %v509_v39 = vpop.permute.xlu1 %508 }
 0x3b9   : > { %v511_v41 = vsel %vm305_vm5, %v509_v39, 0.0 }
 0x3ba   : > { %v512_v42 = vadd.f32 %v511_v41, %v505_v40 }
 0x3bc   : > { %v513_v44 = vadd.f32 %v735_v29, %v512_v42 }
 0x3be   : > { %v519_v45 = vadd.f32 %v517_v43, %v513_v44 }
 0x3c0   : > { %v520_v46 = vmax.f32 %v519_v45, 0.0 }
 0x3c2   : > { %v524_v47 = vpack.c.bf16 %v520_v46, %v520_v46 }
 0x3c4   : > { %745 = vmatprep.subr.msk.bf16.mxu0 %vm441_vm6, %v524_v47  ;;  %v540_v48 = vsel %vm441_vm6, %v524_v47, 0 }
 0x3c5   : > { %738 = vmatpush3.bf16.msra.mxu0 %v540_v48 }
 0x3c8   : > { %740 = vmatmul.mubr.msk.bf16.vlgmr.msra.gmra.mrb[4].mxu0 %vm434_vm3, %v795_v49 }
 0x49b   : > { %v741_v50 = vpop.f32.mrb[4].mxu0 }
 0x49c   : > { %v576_v51 = vpop.f32.mrb[5].mxu0 }
 0x49d   : > { %593 = vrot.lane.b32.xlu0 %v576_v51, %s861_s12  ;;  %v742_v52 = vpop.f32.mrb[6].mxu0 }
 0x49e   : > { %v579_v53 = vpop.f32.mrb[7].mxu0 }
 0x49f   : > { %595 = vrot.lane.b32.xlu1 %v579_v53, %s861_s12  ;;  %s698_s12 = sshll.u32 %s294_s20, 3 }
 0x4a0   : > { %s296_s22 = scalar_lea.vmem [#allocation3], %s698_s12 }
 0x4a1   : > { %385 = vperm.xlu0 %789, %v382_v54   ;;  %s635_s23 = sshll.u32 %s296_s22, 4  ;;  %s1041_s23 = int_to_ptr.vmem [resolvable:$true] %s635_s23 }
 0x4a2   : > { %s796_s9 = scalar_lea.vmem %s1041_s23, 128  ;;  %p803_p0 = scmp.lt.s32.totalorder %s1041_s23, %s801_s13 }
 0x4a3   : > { %613 = vperm.xlu1 %788, %v590_v55   ;;  %p797_p11 = scmp.ne.s32.totalorder %s1041_s23, %s796_s9  ;;  %p804_p1 = scmp.lt.s32.totalorder %s802_s17, %s796_s9 }
 0x4a5   : > { %p798_p12 = pnand %p797_p11, %p947_p5  ;;  %p805_p2 = por %p804_p1, %p803_p0 }
 0x4a7   : > { %p799_p13 = pneg %p798_p12 }
 0x4a9   : > { %p806_p3 = pnand %p805_p2, %p799_p13 }
 0x50f   : > { %v594_v56 = vpop.permute.xlu0 %593 }
 0x510   : > { %599 = vst.msk [vmem:[#allocation2] sm:$0xff] %vm398_vm2, %v594_v56 }
 0x511   : > { %v596_v57 = vpop.permute.xlu1 %595 }
 0x512   : > { %600 = vst.msk [vmem:[#allocation2 + $0x8] sm:$0xff] %vm398_vm2, %v596_v57 }
 0x517   : > { %v601_v60 = vld [vmem:[#allocation2] sm:$0xff] }
 0x518   : > { %v602_v62 = vsel %vm304_vm4, %v601_v60, 0.0 }
 0x519   : > { %v603_v58 = vld [vmem:[#allocation2 + $0x8] sm:$0xff] }
 0x51a   : > { %605 = vrot.lane.b32.xlu1 %v603_v58, %s862_s18 }
 0x520   : > { %v386_v2 = vpop.permute.xlu0 %385 }
 0x521   : > { %v388_v4 = vadd.f32 %v971_v9, %v386_v2 }
 0x522   : > { %v614_v59 = vpop.permute.xlu1 %613 }
 0x58c   : > { %v606_v61 = vpop.permute.xlu1 %605 }
 0x58d   : > { %v608_v63 = vsel %vm305_vm5, %v606_v61, 0.0 }
 0x58e   : > { %v609_v0 = vadd.f32 %v608_v63, %v602_v62 }
 0x590   : > { %v610_v1 = vadd.f32 %v741_v50, %v609_v0 }
 0x592   : > { %v616_v3 = vadd.f32 %v614_v59, %v610_v1 }
 0x594   : > { %v617_v5 = vmax.f32 %v616_v3, 0.0 }
 0x596   : > { %v618_v6 = vadd.f32 %v617_v5, %v388_v4 }
 0x598   : > { %620 = vst.msk [vmem:[%s296_s22] sm:$0xff] %vm619_vm7, %v618_v6 }
 0x599   : > { %809 = shalt.err (!%p806_p3)
}
 0x59a   : > { %s810_s19 = scalar_lea.hbm %s1039_s25, 128  ;;  %s814_s21 = scalar_lea.hbm %s1089_s8, 256 }
 0x59b   : > { %p811_p4 = scmp.ne.s32.totalorder %s1039_s25, %s810_s19  ;;  %p815_p9 = scmp.lt.u32.totalorder %s1039_s25, %s1089_s8 }
 0x59c   : > { %p816_p10 = scmp.lt.u32.totalorder %s814_s21, %s810_s19  ;;  %p818_p12 = scmp.lt.u32.totalorder %s810_s19, %s1039_s25 }
 0x59d   : > { %p812_p7 = pnand %p811_p4, %p947_p5 }
 0x59e   : > { %p817_p11 = por %p816_p10, %p815_p9 }
 0x59f   : > { %p813_p8 = pneg %p812_p7 }
 0x5a0   : > { %p819_p13 = por %p818_p12, %p817_p11 }
 0x5a2   : > { %p820_p0 = pnand %p819_p13, %p813_p8 }
 0x5a4   : > { %823 = shalt.err (!%p820_p0)
}
 0x5a5   : > { %746 = dma.vmem_to_hbm [thread:$0]  (%p947_p5), %s1041_s23, 128, %s1039_s25, %s622_s26  }
 0x5a6 PF: > { %p752_p1 = scmp.ge.s32.totalorder %s858_s30, 2  ;;  %s647_s24 = sand.u32 1, %s846_s27  }
 0x5a7   : > { %s648_s9 = scalar_lea.sflag [#allocation4], %s647_s24 }
 0x5a8   : > { %p749_p2 = pnand %p752_p1, %p951_p6 }
 0x5aa   : > { %841 = dma.done.wait (!%p749_p2), %s648_s9, 128  }
 0x5ab   : > { %843 = vsyncadd (!%p749_p2), %s648_s9, 4294967168  ;;  %p18_p3 = scmp.ge.s32.totalorder %s934_s11, 4   ;;  %s1092_s27 = smov %s850_s28 }
 0x5ac   : > { %s1093_s28 = smov %s854_s29  ;;  %s1094_s29 = smov %s945_s14 }
 0x5ad   : > { %s1095_s30 = smov %s934_s11  ;;  %20 = sbr.rel (!%p18_p3) target bundleno = 3 (0x3), region = 87 }
 0x5b4   :  { %653 = vsyncpa [#allocation4], 1 }
 0x5b5   :  { %655 = vsyncpa [#allocation4 + $0x1], 1 }

</bundles_post_ra>
